<compile_context>
chip_gen: v7x
topology: tpu7x:2x2x1
jax: 0.10.0
libtpu: 0.0.40
codegen_flags: <defaults>
</compile_context>

<pallas_src>
import jax
import jax.numpy as jnp
from jax.experimental import pallas as pl
from jax.experimental.pallas import tpu as pltpu


def _sublane_pack(dtype) -> int:
    """Second-minor (sublane) tile size for `dtype` on TPU (8/16/32)."""
    itemsize = jnp.dtype(dtype).itemsize
    return 8 * max(1, 4 // itemsize)


# ---------------------------------------------------------------------------
# Fast path: tile-aligned channel split -> two whole-array HBM->HBM DMAs.
# ---------------------------------------------------------------------------
def _split_dma_kernel(x_ref, x1_ref, x2_ref, sem):
    c_half = x1_ref.shape[1]
    c_rest = x2_ref.shape[1]
    cp1 = pltpu.make_async_copy(
        x_ref.at[:, pl.ds(0, c_half), :], x1_ref, sem.at[0]
    )
    cp2 = pltpu.make_async_copy(
        x_ref.at[:, pl.ds(c_half, c_rest), :], x2_ref, sem.at[1]
    )
    # Start both whole-array strided copies, then wait: both output streams
    # stay in flight simultaneously, so HBM never idles between them.
    cp1.start()
    cp2.start()
    cp1.wait()
    cp2.wait()


def _split_1d_dma(x, c_half):
    n, c, l = x.shape
    out_shapes = (
        jax.ShapeDtypeStruct((n, c_half, l), x.dtype),
        jax.ShapeDtypeStruct((n, c - c_half, l), x.dtype),
    )
    return pl.pallas_call(
        _split_dma_kernel,
        out_shape=out_shapes,
        grid_spec=pltpu.PrefetchScalarGridSpec(
            num_scalar_prefetch=0,
            grid=(1,),  # single step: two big DMAs cover the whole array
            in_specs=[pl.BlockSpec(memory_space=pl.ANY)],
            out_specs=[
                pl.BlockSpec(memory_space=pl.ANY),
                pl.BlockSpec(memory_space=pl.ANY),
            ],
            scratch_shapes=[pltpu.SemaphoreType.DMA((2,))],
        ),
        compiler_params=pltpu.CompilerParams(
            dimension_semantics=("arbitrary",)
        ),
    )(x)


# ---------------------------------------------------------------------------
# Fallback: tiny / sublane-unaligned split -> batch+lane tiled VMEM copy.
# ---------------------------------------------------------------------------
def _split_vmem_kernel(x_ref, x1_ref, x2_ref):
    # x_ref:  (tb, C,        TL)
    # x1_ref: (tb, C//2,     TL)
    # x2_ref: (tb, C - C//2, TL)
    c_half = x1_ref.shape[1]
    x1_ref[...] = x_ref[:, :c_half, :]
    x2_ref[...] = x_ref[:, c_half:, :]


_VMEM_BUDGET_BYTES = 8 << 20  # ~2x (in + out) double-buffered blocks per step


def _vmem_tiles(n, c, l, itemsize):
    """Pick (tb, tl): lane tile (multiple of 128 or full L) + batch block."""
    per_lane_cost = 4 * c * itemsize  # in + ~out, double-buffered, per lane

    if per_lane_cost * l <= _VMEM_BUDGET_BYTES:
        tl = l  # full lane extent fits (covers small / non-128-multiple L)
    else:
        tl = 128
        for cand in (8192, 4096, 2048, 1024, 512, 256, 128):
            if per_lane_cost * cand <= _VMEM_BUDGET_BYTES:
                tl = cand
                break
        tl = min(tl, max(128, (l // 128) * 128))

    tb = max(1, min(n, _VMEM_BUDGET_BYTES // max(1, per_lane_cost * tl)))
    return tb, tl


def _split_1d_vmem(x, c_half):
    n, c, l = x.shape
    c_rest = c - c_half
    tb, tl = _vmem_tiles(n, c, l, jnp.dtype(x.dtype).itemsize)
    grid = (pl.cdiv(n, tb), pl.cdiv(l, tl))
    out_shapes = (
        jax.ShapeDtypeStruct((n, c_half, l), x.dtype),
        jax.ShapeDtypeStruct((n, c_rest, l), x.dtype),
    )
    return pl.pallas_call(
        _split_vmem_kernel,
        out_shape=out_shapes,
        grid_spec=pltpu.PrefetchScalarGridSpec(
            num_scalar_prefetch=0,
            grid=grid,
            in_specs=[pl.BlockSpec((tb, c, tl), lambda b, j: (b, 0, j))],
            out_specs=[
                pl.BlockSpec((tb, c_half, tl), lambda b, j: (b, 0, j)),
                pl.BlockSpec((tb, c_rest, tl), lambda b, j: (b, 0, j)),
            ],
        ),
        compiler_params=pltpu.CompilerParams(
            dimension_semantics=("parallel", "parallel"),
            vmem_limit_bytes=16 << 20,  # pin budget vs per-gen scoped defaults
        ),
    )(x)


# ---------------------------------------------------------------------------
# Public API
# ---------------------------------------------------------------------------
def split_1d(x):
    """Forward pass of Split_1D: splits x (N, C, L) along the channel dim."""
    n, c, l = x.shape
    c_half = c // 2
    if c_half == 0:
        # Degenerate C == 1: first half is empty, second half is x itself.
        return x[:, :0, :], x
    pack = _sublane_pack(x.dtype)
    if c_half % pack == 0:
        return _split_1d_dma(x, c_half)
    return _split_1d_vmem(x, c_half)


def split_1d_reverse(z1, z2):
    # reverse(z1, z2) = concat along channel dim; simple glue, no hot path.
    return jnp.concatenate((z1, z2), axis=1)


if __name__ == "__main__":
    key = jax.random.PRNGKey(0)

    cases = [
        (2, 4, 16),     # tiny, sublane-unaligned split -> VMEM fallback path
        (2, 5, 16),     # odd channel count -> second half gets the extra channel
        (4, 4, 256),    # fallback path with batch blocking + 128-multiple lanes
        (2, 16, 1024),  # sublane-aligned split -> whole-array HBM->HBM DMA path
    ]
    keys = jax.random.split(key, len(cases))
    for k, (n, c, l) in zip(keys, cases):
        x = jax.random.normal(k, (n, c, l), dtype=jnp.float32)

        x1, x2 = split_1d(x)
        jax.block_until_ready((x1, x2))

        # Correctness check against plain-JAX reference semantics
        ref1 = x[:, : c // 2, :]
        ref2 = x[:, c // 2 :, :]
        assert x1.shape == ref1.shape and x2.shape == ref2.shape
        assert jnp.array_equal(x1, ref1)
        assert jnp.array_equal(x2, ref2)

        # round-trip via reverse
        z = split_1d_reverse(x1, x2)
        assert jnp.array_equal(z, x)

    print("KERNEL_OK")
</pallas_src>

<mosaic_0001>
module attributes {stable_mosaic.version = 11 : i64} {
  func.func @_split_vmem_kernel(%arg0: i32, %arg1: i32, %arg2: memref<2x4x16xf32, #tpu.memory_space<vmem>>, %arg3: memref<2x2x16xf32, #tpu.memory_space<vmem>>, %arg4: memref<2x2x16xf32, #tpu.memory_space<vmem>>) attributes {dimension_semantics = [#tpu.dimension_semantics<parallel>, #tpu.dimension_semantics<parallel>], iteration_bounds = array<i64: 1, 1>, scalar_prefetch = 0 : i64, scratch_operands = 0 : i64, tpu.core_type = #tpu.core_type<tc>, window_params = [{transform_indices = @transform_0, window_bounds = array<i64: 2, 4, 16>}, {transform_indices = @transform_1, window_bounds = array<i64: 2, 2, 16>}, {transform_indices = @transform_2, window_bounds = array<i64: 2, 2, 16>}]} {
    %c0 = arith.constant 0 : index
    %c0_0 = arith.constant 0 : index
    %c0_1 = arith.constant 0 : index
    %0 = vector.load %arg2[%c0, %c0_0, %c0_1] : memref<2x4x16xf32, #tpu.memory_space<vmem>>, vector<2x2x16xf32>
    %c0_2 = arith.constant 0 : index
    %c0_3 = arith.constant 0 : index
    %c0_4 = arith.constant 0 : index
    %1 = vector.load %arg3[%c0_2, %c0_3, %c0_4] : memref<2x2x16xf32, #tpu.memory_space<vmem>>, vector<2x2x16xf32>
    tpu.vector_store %arg3[%c0_2, %c0_3, %c0_4], %0 {strides = array<i32>} : memref<2x2x16xf32, #tpu.memory_space<vmem>>, vector<2x2x16xf32>,
    %c0_5 = arith.constant 0 : index
    %c2 = arith.constant 2 : index
    %c0_6 = arith.constant 0 : index
    %2 = vector.load %arg2[%c0_5, %c2, %c0_6] : memref<2x4x16xf32, #tpu.memory_space<vmem>>, vector<2x2x16xf32>
    %c0_7 = arith.constant 0 : index
    %c0_8 = arith.constant 0 : index
    %c0_9 = arith.constant 0 : index
    %3 = vector.load %arg4[%c0_7, %c0_8, %c0_9] : memref<2x2x16xf32, #tpu.memory_space<vmem>>, vector<2x2x16xf32>
    tpu.vector_store %arg4[%c0_7, %c0_8, %c0_9], %2 {strides = array<i32>} : memref<2x2x16xf32, #tpu.memory_space<vmem>>, vector<2x2x16xf32>,
    return
  }
  func.func @transform_0(%arg0: i32, %arg1: i32) -> (i32, i32, i32) {
    %c0_i32 = arith.constant 0 : i32
    %c0_i32_0 = arith.constant 0 : i32
    return %arg0, %c0_i32, %arg1 : i32, i32, i32
  }
  func.func @transform_1(%arg0: i32, %arg1: i32) -> (i32, i32, i32) {
    %c0_i32 = arith.constant 0 : i32
    %c0_i32_0 = arith.constant 0 : i32
    return %arg0, %c0_i32, %arg1 : i32, i32, i32
  }
  func.func @transform_2(%arg0: i32, %arg1: i32) -> (i32, i32, i32) {
    %c0_i32 = arith.constant 0 : i32
    %c0_i32_0 = arith.constant 0 : i32
    return %arg0, %c0_i32, %arg1 : i32, i32, i32
  }
}

</mosaic_0001>

<bundles_post_ra>
// kernel: tpu_custom_call.1
= control target key start
LH: loop header
LB: loop body
LE: loop exit
PB: predicated region body
PF: predicated region fallthrough
CT: control target
= control target key end

     0   :  { %8 = vsyncpa [#allocation3], 0  ;;  %s212_s0 = inlined_call_operand.hbm [shape: f32[2,4,16], index: 0, kind: input, shape index: {}]   ;;  %s213_s1 = inlined_call_operand.hbm [shape: f32[2,2,16], index: 1, kind: output, shape index: {0}]   ;;  %s214_s2 = inlined_call_operand.hbm [shape: f32[2,2,16], index: 2, kind: output, shape index: {1}]  }
   0x1   :  { %9 = vsyncpa [#allocation4], 0 }
   0x2   :  { %10 = vsyncpa [#allocation7], 0  ;;  %s147_s9 = smov [#allocation2]   ;;  %s75_s13 = scalar_lea.hbm %s212_s0, 128 }
   0x3   :  { %s16_s10 = sshll.u32 %s147_s9, 4  ;;  %p76_p0 = scmp.ne.s32.totalorder %s212_s0, %s75_s13  ;;  %s17_s10 = int_to_ptr.vmem [resolvable:$true] %s16_s10 }
   0x4   :  { %p79_p1 = scmp.lt.u32.totalorder %s75_s13, %s212_s0 }
   0x6   :  { %p81_p2 = pnand %p79_p1, %p76_p0 }
   0x8   :  { %84 = shalt.err (!%p81_p2)
}
   0x9   :  { %s85_s18 = scalar_lea.vmem %s17_s10, 128  ;;  %p90_p4 = scmp.lt.s32.totalorder %s17_s10, %s17_s10 }
   0xa   :  { %p86_p3 = scmp.ne.s32.totalorder %s17_s10, %s85_s18  ;;  %p91_p5 = scmp.lt.s32.totalorder %s85_s18, %s85_s18 }
   0xc   :  { %p92_p6 = por %p91_p5, %p90_p4 }
   0xe   :  { %p93_p7 = pnand %p92_p6, %p86_p3 }
  0x10   :  { %96 = shalt.err (!%p93_p7)
}
  0x11   :  { %s148_s19 = smov 64   ;;  %s149_s20 = smov 4  }
  0x12   :  { %22 = dma.hbm_to_vmem [thread:$0]  %s212_s0, 128, %s17_s10, [#allocation3], %s148_s19, %s148_s19, %s149_s20  }
  0x13   :  { %141 = dma.done.wait [#allocation3], 128  }
  0x14   :  { %142 = vsyncadd [#allocation3], 4294967168  ;;  %s150_s23 = smov [#allocation5]   ;;  %s151_s25 = smov [#allocation6]   ;;  %vm28_vm0 = vcmask 123904  }
  0x15   :  { %s40_s24 = sshll.u32 %s150_s23, 4  ;;  %s52_s26 = sshll.u32 %s151_s25, 4  ;;  %v26_v0 = vld [vmem:[#allocation2] sm:$0x3]  ;;  %v27_v1 = vld [vmem:[#allocation2 + $0x4] sm:$0x3]  ;;  %s41_s24 = int_to_ptr.vmem [resolvable:$true] %s40_s24  ;;  %s181_s26 = int_to_ptr.vmem [resolvable:$true] %s52_s26 }
  0x16   :  { %v31_v2 = vld [vmem:[#allocation2 + $0x2] sm:$0x3]  ;;  %29 = vst.msk [vmem:[#allocation5] sm:$0x3] %vm28_vm0, %v26_v0  ;;  %30 = vst.msk [vmem:[#allocation5 + $0x2] sm:$0x3] %vm28_vm0, %v27_v1  ;;  %p102_p9 = scmp.lt.s32.totalorder %s41_s24, %s41_s24 }
  0x17   :  { %33 = vst.msk [vmem:[#allocation6] sm:$0x3] %vm28_vm0, %v31_v2  ;;  %v32_v3 = vld [vmem:[#allocation2 + $0x6] sm:$0x3]  ;;  %s97_s27 = scalar_lea.vmem %s41_s24, 64 }
  0x18   :  { %34 = vst.msk [vmem:[#allocation6 + $0x2] sm:$0x3] %vm28_vm0, %v32_v3  ;;  %p98_p8 = scmp.ne.s32.totalorder %s41_s24, %s97_s27  ;;  %p103_p10 = scmp.lt.s32.totalorder %s97_s27, %s97_s27 }
  0x1a   :  { %p104_p11 = por %p103_p10, %p102_p9 }
  0x1c   :  { %p105_p12 = pnand %p104_p11, %p98_p8 }
  0x1e   :  { %108 = shalt.err (!%p105_p12)
}
  0x1f   :  { %s109_s29 = scalar_lea.hbm %s213_s1, 64 }
  0x20   :  { %p110_p13 = scmp.ne.s32.totalorder %s213_s1, %s109_s29  ;;  %p113_p0 = scmp.lt.u32.totalorder %s109_s29, %s213_s1 }
  0x22   :  { %p115_p1 = pnand %p113_p0, %p110_p13 }
  0x24   :  { %118 = shalt.err (!%p115_p1)
}
  0x25   :  { %s152_s6 = smov 32   ;;  %s153_s7 = smov 2  }
  0x26   :  { %46 = dma.vmem_to_hbm [thread:$0]  %s41_s24, 64, %s213_s1, [#allocation4], %s152_s6, %s152_s6, %s153_s7  }
  0x27   :  { %s119_s10 = scalar_lea.vmem %s181_s26, 64  ;;  %p124_p3 = scmp.lt.s32.totalorder %s181_s26, %s181_s26 }
  0x28   :  { %p120_p2 = scmp.ne.s32.totalorder %s181_s26, %s119_s10  ;;  %p125_p4 = scmp.lt.s32.totalorder %s119_s10, %s119_s10 }
  0x2a   :  { %p126_p5 = por %p125_p4, %p124_p3 }
  0x2c   :  { %p127_p6 = pnand %p126_p5, %p120_p2 }
  0x2e   :  { %130 = shalt.err (!%p127_p6)
}
  0x2f   :  { %s131_s13 = scalar_lea.hbm %s214_s2, 64 }
  0x30   :  { %p132_p7 = scmp.ne.s32.totalorder %s214_s2, %s131_s13  ;;  %p135_p8 = scmp.lt.u32.totalorder %s131_s13, %s214_s2 }
  0x32   :  { %p137_p9 = pnand %p135_p8, %p132_p7 }
  0x34   :  { %140 = shalt.err (!%p137_p9)
}
  0x35   :  { %58 = dma.vmem_to_hbm [thread:$0]  %s181_s26, 64, %s214_s2, [#allocation7], %s152_s6, %s152_s6, %s153_s7  }
  0x36   :  { %143 = dma.done.wait [#allocation4], 64  }
  0x37   :  { %144 = vsyncadd [#allocation4], 4294967232 }
  0x38   :  { %145 = dma.done.wait [#allocation7], 64  }
  0x39   :  { %146 = vsyncadd [#allocation7], 4294967232 }
  0x3a   :  { %65 = vsyncpa [#allocation3], 1 }
  0x3b   :  { %66 = vsyncpa [#allocation4], 1 }
  0x3c   :  { %67 = vsyncpa [#allocation7], 1 }

</bundles_post_ra>
